<compile_context>
chip_gen: v7x
topology: tpu7x:2x2x1
jax: 0.10.0
libtpu: 0.0.40
codegen_flags: <defaults>
</compile_context>

<pallas_src>
import jax
import jax.numpy as jnp
import numpy as np
from jax.experimental import pallas as pl
from jax.experimental.pallas import tpu as pltpu

# ----------------------------- configuration -------------------------------
CFG = {
    "stride": [8, 16, 32],          # pyramid strides (3 levels)
    "head_dim": 32,                 # FPN / head channel dim
    "bk_dims": [16, 32, 64],        # synthetic backbone channel dims
}
NUM_CLASSES = 20
IMG_C = 3

CPAD = 128                          # lane-padded channel width
HEAD_OUT = NUM_CLASSES + 4 + 1      # cls | reg | ctn = 25 valid head columns


def _cdiv(a, b):
    return (a + b - 1) // b


def _round_up(x, m):
    return ((x + m - 1) // m) * m


def _vmem_budget_bytes():
    """~75% of physical VMEM, capped at 96 MiB (=> 48 MiB on v7x's 64 MiB/TC)."""
    cap = 128 * 1024 * 1024
    try:
        info = pltpu.get_tpu_info()
        cap = int(getattr(info, "vmem_capacity_bytes", cap))
    except Exception:
        pass
    return min(96 * 1024 * 1024, (cap * 3) // 4)


VMEM_BUDGET = _vmem_budget_bytes()


def _choose_bm(M, p_pad):
    """Pick row-block size bm and an even grid-step count (>=2)."""
    # bytes per row held in VMEM: double-buffered bf16 patch block + bf16 out block
    per_row = 2 * (p_pad * 2) + 2 * (CPAD * 2)
    # reserve for (double-buffered) weights/biases/mask + slack
    reserve = 4 * (p_pad * CPAD * 2 + 2 * CPAD * CPAD * 2) + (4 << 20)
    cap = max(16, (VMEM_BUDGET - reserve) // per_row)
    bm_hi = 4096 if VMEM_BUDGET >= (64 << 20) else 2048   # v5e/v6e vs v7x
    cap = min(cap, bm_hi)
    cap = max(16, (cap // 16) * 16)
    n_steps = max(2, _cdiv(M, cap))          # >=2 steps => both v7x TCs active
    if n_steps % 2:
        n_steps += 1                         # even step count shards evenly
    bm = _round_up(_cdiv(M, n_steps), 16)    # multiple of 16 for bf16 blocks
    return bm, n_steps


# ------------------------------ Pallas kernel ------------------------------
def fcos_level_kernel(
    patches_ref,                 # (bm, P_pad)  bf16 space-to-depth image patches
    wbk_ref, bbk_ref,            # (P_pad, 128) bf16, (1, 128) f32   synthetic backbone
    wfpn_ref, bfpn_ref,          # (128, 128) bf16,  (1, 128) f32    synthetic FPN lateral
    whead_ref, bhead_ref,        # (128, 128) bf16,  (1, 128) f32    fused cls|reg|ctn head
    regmask_ref,                 # (1, 128) f32: 1.0 on reg columns, else 0.0
    out_ref,                     # (bm, 128) bf16 fused head output (lane dense)
):
    x = patches_ref[...]                                               # bf16

    # backbone 1x1-equivalent conv + relu (f32 accumulate / elementwise)
    f = jnp.dot(x, wbk_ref[...], preferred_element_type=jnp.float32) + bbk_ref[...]
    f = jnp.maximum(f, 0.0).astype(jnp.bfloat16)

    # FPN lateral projection + relu
    f = jnp.dot(f, wfpn_ref[...], preferred_element_type=jnp.float32) + bfpn_ref[...]
    f = jnp.maximum(f, 0.0).astype(jnp.bfloat16)

    # fused heads: cols [0:20]=cls, [20:24]=reg (scale*stride pre-folded),
    # [24:25]=ctn, rest zero pad.  FCOS reg transform = relu on reg cols only.
    h = jnp.dot(f, whead_ref[...], preferred_element_type=jnp.float32) + bhead_ref[...]
    is_reg = regmask_ref[...] > 0.5
    out_ref[...] = jnp.where(is_reg, jnp.maximum(h, 0.0), h).astype(out_ref.dtype)


# ------------------------- per-level kernel wrapper -------------------------
def _pad2(w, rows, cols):
    return jnp.pad(w, ((0, rows - w.shape[0]), (0, cols - w.shape[1])))


def prepare_level_params(p, scale_value, stride, p_pad):
    """Zero-pad channels to 128 lanes, fuse the heads, fold scale*stride into reg."""
    w_bk = _pad2(p["w_bk"], p_pad, CPAD).astype(jnp.bfloat16)
    b_bk = _pad2(p["b_bk"], 1, CPAD).astype(jnp.float32)
    w_fpn = _pad2(p["w_fpn"], CPAD, CPAD).astype(jnp.bfloat16)
    b_fpn = _pad2(p["b_fpn"], 1, CPAD).astype(jnp.float32)
    # relu(scale*reg)*stride == relu((scale*stride)*reg)  (exact: stride > 0)
    ss = jnp.asarray(scale_value, jnp.float32) * jnp.float32(stride)
    w_head = jnp.concatenate([p["w_cls"], p["w_reg"] * ss, p["w_ctn"]], axis=1)
    b_head = jnp.concatenate([p["b_cls"], p["b_reg"] * ss, p["b_ctn"]], axis=1)
    w_head = _pad2(w_head, CPAD, CPAD).astype(jnp.bfloat16)
    b_head = _pad2(b_head, 1, CPAD).astype(jnp.float32)
    col = jnp.arange(CPAD)
    reg_mask = ((col >= NUM_CLASSES) & (col < NUM_CLASSES + 4)).astype(jnp.float32)
    reg_mask = reg_mask.reshape(1, CPAD)
    return w_bk, b_bk, w_fpn, b_fpn, w_head, b_head, reg_mask


def run_fcos_level(patches_bf16, level_params, scale_value, stride):
    """patches_bf16: (M, P) bf16.  Returns fused (M, 128) bf16 head output."""
    M, P = patches_bf16.shape
    p_pad = _round_up(P, CPAD)               # lane-dense patch loads (192 -> 256)

    bm, n_steps = _choose_bm(M, p_pad)
    Mp = n_steps * bm

    # single pad pass (rows + cols), stays bf16
    if Mp != M or p_pad != P:
        patches_bf16 = jnp.pad(patches_bf16, ((0, Mp - M), (0, p_pad - P)))

    w_bk, b_bk, w_fpn, b_fpn, w_head, b_head, reg_mask = prepare_level_params(
        level_params, scale_value, stride, p_pad)

    flops = 2 * Mp * (p_pad * CPAD + CPAD * CPAD + CPAD * CPAD)
    bytes_accessed = (Mp * p_pad * 2 + Mp * CPAD * 2
                      + (p_pad * CPAD + 2 * CPAD * CPAD) * 2
                      + 3 * CPAD * 4 + CPAD * 4)
    cost = pl.CostEstimate(flops=flops, transcendentals=0,
                           bytes_accessed=bytes_accessed)

    resident = lambda i: (0, 0)     # weights / biases / mask stay in VMEM across grid

    out = pl.pallas_call(
        fcos_level_kernel,
        out_shape=jax.ShapeDtypeStruct((Mp, CPAD), jnp.bfloat16),
        grid=(n_steps,),
        in_specs=[
            pl.BlockSpec((bm, p_pad), lambda i: (i, 0)),        # patches (row-tiled)
            pl.BlockSpec((p_pad, CPAD), resident),              # w_bk
            pl.BlockSpec((1, CPAD), resident),                  # b_bk
            pl.BlockSpec((CPAD, CPAD), resident),               # w_fpn
            pl.BlockSpec((1, CPAD), resident),                  # b_fpn
            pl.BlockSpec((CPAD, CPAD), resident),               # w_head (scale folded)
            pl.BlockSpec((1, CPAD), resident),                  # b_head (scale folded)
            pl.BlockSpec((1, CPAD), resident),                  # reg-column mask
        ],
        out_specs=pl.BlockSpec((bm, CPAD), lambda i: (i, 0)),
        compiler_params=pltpu.CompilerParams(
            dimension_semantics=("parallel",),
            vmem_limit_bytes=VMEM_BUDGET,
        ),
        cost_estimate=cost,
    )(patches_bf16, w_bk, b_bk, w_fpn, b_fpn, w_head, b_head, reg_mask)

    return out[:M]


# --------------------------------- glue ------------------------------------
def space_to_depth_nchw(x_nchw, stride):
    """NCHW -> (B*Hs*Ws, stride*stride*C) patches, rows in (b, h, w) row-major order."""
    B, C, H, W = x_nchw.shape
    Hs, Ws = H // stride, W // stride
    x = x_nchw.reshape(B, C, Hs, stride, Ws, stride)
    x = jnp.transpose(x, (0, 2, 4, 3, 5, 1))          # (B, Hs, Ws, sh, sw, C)
    return x.reshape(B * Hs * Ws, stride * stride * C)


def generate_anchors(stride, fmp_h, fmp_w):
    """Matches FCOS.generate_anchors (meshgrid indexing='ij', stack [x, y])."""
    ay, ax = jnp.meshgrid(jnp.arange(fmp_h), jnp.arange(fmp_w), indexing="ij")
    xy = jnp.stack([ax, ay], axis=-1).astype(jnp.float32).reshape(-1, 2) + 0.5
    return xy * float(stride)


def init_params(key):
    """Deterministic synthetic weights (shapes implied by cfg)."""
    params = []
    dh = CFG["head_dim"]
    keys = jax.random.split(key, 5 * len(CFG["stride"]))
    for lvl, (s, dbk) in enumerate(zip(CFG["stride"], CFG["bk_dims"])):
        p_in = IMG_C * s * s
        k = keys[5 * lvl: 5 * lvl + 5]
        params.append({
            "w_bk":  jax.random.normal(k[0], (p_in, dbk), jnp.float32) * (1.0 / p_in ** 0.5),
            "b_bk":  jnp.zeros((1, dbk), jnp.float32),
            "w_fpn": jax.random.normal(k[1], (dbk, dh), jnp.float32) * (1.0 / dbk ** 0.5),
            "b_fpn": jnp.zeros((1, dh), jnp.float32),
            "w_cls": jax.random.normal(k[2], (dh, NUM_CLASSES), jnp.float32) * (1.0 / dh ** 0.5),
            "b_cls": jnp.zeros((1, NUM_CLASSES), jnp.float32),
            "w_reg": jax.random.normal(k[3], (dh, 4), jnp.float32) * (1.0 / dh ** 0.5),
            "b_reg": jnp.zeros((1, 4), jnp.float32),
            "w_ctn": jax.random.normal(k[4], (dh, 1), jnp.float32) * (1.0 / dh ** 0.5),
            "b_ctn": jnp.zeros((1, 1), jnp.float32),
        })
    return params


def fcos_forward(x_nchw, params, scales):
    """Trainable-branch forward: returns dict of per-level predictions (f32)."""
    B = x_nchw.shape[0]
    x_bf16 = x_nchw.astype(jnp.bfloat16)       # cast ONCE, before any rearrangement
    all_cls, all_reg, all_ctn, all_anchors = [], [], [], []
    for lvl, stride in enumerate(CFG["stride"]):
        H = x_nchw.shape[2] // stride
        W = x_nchw.shape[3] // stride
        patches = space_to_depth_nchw(x_bf16, stride)                 # (B*H*W, P) bf16
        fused = run_fcos_level(patches, params[lvl], scales[lvl], stride)
        all_cls.append(fused[:, :NUM_CLASSES]
                       .astype(jnp.float32).reshape(B, H * W, NUM_CLASSES))
        all_reg.append(fused[:, NUM_CLASSES:NUM_CLASSES + 4]
                       .astype(jnp.float32).reshape(B, H * W, 4))
        all_ctn.append(fused[:, NUM_CLASSES + 4:HEAD_OUT]
                       .astype(jnp.float32).reshape(B, H * W, 1))
        all_anchors.append(generate_anchors(stride, H, W))
    # TODO(synk): inference post_process (topk sort / thresholding / host-numpy
    # multiclass NMS) and the optional mask interpolation path are not Pallas-
    # translatable; only the trainable forward is implemented.
    return {
        "pred_cls": all_cls,
        "pred_reg": all_reg,
        "pred_ctn": all_ctn,
        "anchors": all_anchors,
        "strides": CFG["stride"],
        "mask": [],
    }


def fcos_level_reference(patches_f32, p, scale_value, stride):
    """Pure-JAX f32 reference of one level (for correctness check only)."""
    f = jnp.maximum(patches_f32 @ p["w_bk"] + p["b_bk"], 0.0)
    f = jnp.maximum(f @ p["w_fpn"] + p["b_fpn"], 0.0)
    cls = f @ p["w_cls"] + p["b_cls"]
    reg = jnp.maximum((f @ p["w_reg"] + p["b_reg"]) * scale_value, 0.0) * stride
    ctn = f @ p["w_ctn"] + p["b_ctn"]
    return cls, reg, ctn


# --------------------------------- main -------------------------------------
if __name__ == "__main__":
    key = jax.random.PRNGKey(0)
    k_img, k_par = jax.random.split(key)

    # small deterministic input, NCHW like PyTorch: B=2, C=3, 64x64
    x = jax.random.normal(k_img, (2, IMG_C, 64, 64), jnp.float32)
    params = init_params(k_par)
    scales = [jnp.float32(1.0) for _ in CFG["stride"]]           # Scale() init 1.0

    out = fcos_forward(x, params, scales)
    out = jax.block_until_ready(out)

    # shape + numerical sanity checks against a pure-JAX f32 reference
    B = x.shape[0]
    for lvl, stride in enumerate(CFG["stride"]):
        H = 64 // stride
        M = H * H
        assert out["pred_cls"][lvl].shape == (B, M, NUM_CLASSES)
        assert out["pred_reg"][lvl].shape == (B, M, 4)
        assert out["pred_ctn"][lvl].shape == (B, M, 1)
        assert out["anchors"][lvl].shape == (M, 2)
        assert bool(jnp.all(out["pred_reg"][lvl] >= 0.0))        # relu * stride >= 0
        assert bool(jnp.all(jnp.isfinite(out["pred_cls"][lvl])))

        patches_f32 = space_to_depth_nchw(x, stride)
        ref_cls, ref_reg, ref_ctn = fcos_level_reference(
            patches_f32, params[lvl], scales[lvl], stride)
        for got, ref in [
            (out["pred_cls"][lvl].reshape(-1, NUM_CLASSES), ref_cls),
            (out["pred_reg"][lvl].reshape(-1, 4), ref_reg),
            (out["pred_ctn"][lvl].reshape(-1, 1), ref_ctn),
        ]:
            denom = float(jnp.max(jnp.abs(ref))) + 1e-6
            rel_err = float(jnp.max(jnp.abs(got - ref))) / denom
            assert rel_err < 0.08, f"level {lvl}: rel_err {rel_err}"

    print("KERNEL_OK")
</pallas_src>

<mosaic_0001>
module attributes {stable_mosaic.version = 11 : i64} {
  func.func @fcos_level_kernel(%arg0: i32, %arg1: memref<64x256xbf16, #tpu.memory_space<vmem>>, %arg2: memref<256x128xbf16, #tpu.memory_space<vmem>>, %arg3: memref<1x128xf32, #tpu.memory_space<vmem>>, %arg4: memref<128x128xbf16, #tpu.memory_space<vmem>>, %arg5: memref<1x128xf32, #tpu.memory_space<vmem>>, %arg6: memref<128x128xbf16, #tpu.memory_space<vmem>>, %arg7: memref<1x128xf32, #tpu.memory_space<vmem>>, %arg8: memref<1x128xf32, #tpu.memory_space<vmem>>, %arg9: memref<64x128xbf16, #tpu.memory_space<vmem>>) attributes {dimension_semantics = [#tpu.dimension_semantics<parallel>], iteration_bounds = array<i64: 2>, scalar_prefetch = 0 : i64, scratch_operands = 0 : i64, tpu.core_type = #tpu.core_type<tc>, window_params = [{transform_indices = @transform_0, window_bounds = array<i64: 64, 256>}, {pipeline_mode = #tpu.pipeline_mode<synchronous>, transform_indices = @transform_1, window_bounds = array<i64: 256, 128>}, {pipeline_mode = #tpu.pipeline_mode<synchronous>, transform_indices = @transform_2, window_bounds = array<i64: 1, 128>}, {pipeline_mode = #tpu.pipeline_mode<synchronous>, transform_indices = @transform_3, window_bounds = array<i64: 128, 128>}, {pipeline_mode = #tpu.pipeline_mode<synchronous>, transform_indices = @transform_4, window_bounds = array<i64: 1, 128>}, {pipeline_mode = #tpu.pipeline_mode<synchronous>, transform_indices = @transform_5, window_bounds = array<i64: 128, 128>}, {pipeline_mode = #tpu.pipeline_mode<synchronous>, transform_indices = @transform_6, window_bounds = array<i64: 1, 128>}, {pipeline_mode = #tpu.pipeline_mode<synchronous>, transform_indices = @transform_7, window_bounds = array<i64: 1, 128>}, {transform_indices = @transform_8, window_bounds = array<i64: 64, 128>}]} {
    %c0 = arith.constant 0 : index
    %c0_0 = arith.constant 0 : index
    %0 = vector.load %arg1[%c0, %c0_0] : memref<64x256xbf16, #tpu.memory_space<vmem>>, vector<64x256xbf16>
    %c0_1 = arith.constant 0 : index
    %c0_2 = arith.constant 0 : index
    %1 = vector.load %arg2[%c0_1, %c0_2] : memref<256x128xbf16, #tpu.memory_space<vmem>>, vector<256x128xbf16>
    %cst = arith.constant dense<0.000000e+00> : vector<64x128xf32>
    %2 = tpu.matmul %0, %1, %cst {dimension_numbers = #tpu.dot_dimension_numbers<[1], [0], [0], [1], [0, 0, 1, 1], [], []>} : vector<64x256xbf16>, vector<256x128xbf16>, vector<64x128xf32> -> vector<64x128xf32>
    %c0_3 = arith.constant 0 : index
    %c0_4 = arith.constant 0 : index
    %3 = vector.load %arg3[%c0_3, %c0_4] : memref<1x128xf32, #tpu.memory_space<vmem>>, vector<1x128xf32>
    %4 = vector.broadcast %3 : vector<1x128xf32> to vector<64x128xf32>
    %5 = arith.addf %2, %4 : vector<64x128xf32>
    %cst_5 = arith.constant 0.000000e+00 : f32
    %6 = vector.broadcast %cst_5 : f32 to vector<64x128xf32>
    %7 = arith.maximumf %5, %6 : vector<64x128xf32>
    %8 = arith.truncf %7 : vector<64x128xf32> to vector<64x128xbf16>
    %c0_6 = arith.constant 0 : index
    %c0_7 = arith.constant 0 : index
    %9 = vector.load %arg4[%c0_6, %c0_7] : memref<128x128xbf16, #tpu.memory_space<vmem>>, vector<128x128xbf16>
    %cst_8 = arith.constant dense<0.000000e+00> : vector<64x128xf32>
    %10 = tpu.matmul %8, %9, %cst_8 {dimension_numbers = #tpu.dot_dimension_numbers<[1], [0], [0], [1], [0, 0, 1, 1], [], []>} : vector<64x128xbf16>, vector<128x128xbf16>, vector<64x128xf32> -> vector<64x128xf32>
    %c0_9 = arith.constant 0 : index
    %c0_10 = arith.constant 0 : index
    %11 = vector.load %arg5[%c0_9, %c0_10] : memref<1x128xf32, #tpu.memory_space<vmem>>, vector<1x128xf32>
    %12 = vector.broadcast %11 : vector<1x128xf32> to vector<64x128xf32>
    %13 = arith.addf %10, %12 : vector<64x128xf32>
    %cst_11 = arith.constant 0.000000e+00 : f32
    %14 = vector.broadcast %cst_11 : f32 to vector<64x128xf32>
    %15 = arith.maximumf %13, %14 : vector<64x128xf32>
    %16 = arith.truncf %15 : vector<64x128xf32> to vector<64x128xbf16>
    %c0_12 = arith.constant 0 : index
    %c0_13 = arith.constant 0 : index
    %17 = vector.load %arg6[%c0_12, %c0_13] : memref<128x128xbf16, #tpu.memory_space<vmem>>, vector<128x128xbf16>
    %cst_14 = arith.constant dense<0.000000e+00> : vector<64x128xf32>
    %18 = tpu.matmul %16, %17, %cst_14 {dimension_numbers = #tpu.dot_dimension_numbers<[1], [0], [0], [1], [0, 0, 1, 1], [], []>} : vector<64x128xbf16>, vector<128x128xbf16>, vector<64x128xf32> -> vector<64x128xf32>
    %c0_15 = arith.constant 0 : index
    %c0_16 = arith.constant 0 : index
    %19 = vector.load %arg7[%c0_15, %c0_16] : memref<1x128xf32, #tpu.memory_space<vmem>>, vector<1x128xf32>
    %20 = vector.broadcast %19 : vector<1x128xf32> to vector<64x128xf32>
    %21 = arith.addf %18, %20 : vector<64x128xf32>
    %c0_17 = arith.constant 0 : index
    %c0_18 = arith.constant 0 : index
    %22 = vector.load %arg8[%c0_17, %c0_18] : memref<1x128xf32, #tpu.memory_space<vmem>>, vector<1x128xf32>
    %cst_19 = arith.constant 5.000000e-01 : f32
    %23 = vector.broadcast %cst_19 : f32 to vector<1x128xf32>
    %24 = arith.cmpf ogt, %22, %23 : vector<1x128xf32>
    %cst_20 = arith.constant 0.000000e+00 : f32
    %25 = vector.broadcast %cst_20 : f32 to vector<64x128xf32>
    %26 = arith.maximumf %21, %25 : vector<64x128xf32>
    %27 = vector.shape_cast %24 : vector<1x128xi1> to vector<1x128xi1>
    %28 = vector.broadcast %27 : vector<1x128xi1> to vector<64x128xi1>
    %29 = arith.select %28, %26, %21 : vector<64x128xi1>, vector<64x128xf32>
    %30 = arith.truncf %29 : vector<64x128xf32> to vector<64x128xbf16>
    %c0_21 = arith.constant 0 : index
    %c0_22 = arith.constant 0 : index
    %31 = vector.load %arg9[%c0_21, %c0_22] : memref<64x128xbf16, #tpu.memory_space<vmem>>, vector<64x128xbf16>
    tpu.vector_store %arg9[%c0_21, %c0_22], %30 {strides = array<i32>} : memref<64x128xbf16, #tpu.memory_space<vmem>>, vector<64x128xbf16>,
    return
  }
  func.func @transform_0(%arg0: i32) -> (i32, i32) {
    %c0_i32 = arith.constant 0 : i32
    %c0_i32_0 = arith.constant 0 : i32
    return %arg0, %c0_i32 : i32, i32
  }
  func.func @transform_1(%arg0: i32) -> (i32, i32) {
    %c0_i32 = arith.constant 0 : i32
    %c0_i32_0 = arith.constant 0 : i32
    %c0_i32_1 = arith.constant 0 : i32
    return %c0_i32, %c0_i32_0 : i32, i32
  }
  func.func @transform_2(%arg0: i32) -> (i32, i32) {
    %c0_i32 = arith.constant 0 : i32
    %c0_i32_0 = arith.constant 0 : i32
    %c0_i32_1 = arith.constant 0 : i32
    return %c0_i32, %c0_i32_0 : i32, i32
  }
  func.func @transform_3(%arg0: i32) -> (i32, i32) {
    %c0_i32 = arith.constant 0 : i32
    %c0_i32_0 = arith.constant 0 : i32
    %c0_i32_1 = arith.constant 0 : i32
    return %c0_i32, %c0_i32_0 : i32, i32
  }
  func.func @transform_4(%arg0: i32) -> (i32, i32) {
    %c0_i32 = arith.constant 0 : i32
    %c0_i32_0 = arith.constant 0 : i32
    %c0_i32_1 = arith.constant 0 : i32
    return %c0_i32, %c0_i32_0 : i32, i32
  }
  func.func @transform_5(%arg0: i32) -> (i32, i32) {
    %c0_i32 = arith.constant 0 : i32
    %c0_i32_0 = arith.constant 0 : i32
    %c0_i32_1 = arith.constant 0 : i32
    return %c0_i32, %c0_i32_0 : i32, i32
  }
  func.func @transform_6(%arg0: i32) -> (i32, i32) {
    %c0_i32 = arith.constant 0 : i32
    %c0_i32_0 = arith.constant 0 : i32
    %c0_i32_1 = arith.constant 0 : i32
    return %c0_i32, %c0_i32_0 : i32, i32
  }
  func.func @transform_7(%arg0: i32) -> (i32, i32) {
    %c0_i32 = arith.constant 0 : i32
    %c0_i32_0 = arith.constant 0 : i32
    %c0_i32_1 = arith.constant 0 : i32
    return %c0_i32, %c0_i32_0 : i32, i32
  }
  func.func @transform_8(%arg0: i32) -> (i32, i32) {
    %c0_i32 = arith.constant 0 : i32
    %c0_i32_0 = arith.constant 0 : i32
    return %arg0, %c0_i32 : i32, i32
  }
}

</mosaic_0001>

<bundles_post_ra>
// kernel: tpu_custom_call.1
= control target key start
LH: loop header
LB: loop body
LE: loop exit
PB: predicated region body
PF: predicated region fallthrough
CT: control target
= control target key end

     0   :  { %s2340_s0 = inlined_call_operand.hbm [shape: bf16[128,256], index: 0, kind: input, shape index: {}]   ;;  %s2341_s1 = inlined_call_operand.hbm [shape: bf16[256,128], index: 1, kind: input, shape index: {}]   ;;  %s2342_s2 = inlined_call_operand.hbm [shape: f32[1,128], index: 2, kind: input, shape index: {}]   ;;  %s2343_s3 = inlined_call_operand.hbm [shape: bf16[128,128], index: 3, kind: input, shape index: {}]   ;;  %s2344_s4 = inlined_call_operand.hbm [shape: f32[1,128], index: 4, kind: input, shape index: {}]   ;;  %s2345_s5 = inlined_call_operand.hbm [shape: bf16[128,128], index: 5, kind: input, shape index: {}]   ;;  %s2346_s6 = inlined_call_operand.hbm [shape: f32[1,128], index: 6, kind: input, shape index: {}]   ;;  %s2347_s7 = inlined_call_operand.hbm [shape: f32[1,128], index: 7, kind: input, shape index: {}]   ;;  %s2348_s8 = inlined_call_operand.hbm [shape: bf16[128,128], index: 8, kind: output, shape index: {}]  }
   0x1   :  { %2352 = sst [smem:[#allocation23_spill]] %s2341_s1 }
   0x2   :  { %13 = vsyncpa [#allocation3], 0 }
   0x3   :  { %15 = vsyncpa [#allocation3 + $0x1], 0 }
   0x4   :  { %16 = vsyncpa [#allocation6], 0 }
   0x5   :  { %17 = vsyncpa [#allocation9], 0 }
   0x6   :  { %18 = vsyncpa [#allocation12], 0 }
   0x7   :  { %19 = vsyncpa [#allocation15], 0 }
   0x8   :  { %20 = vsyncpa [#allocation4], 0 }
   0x9   :  { %22 = vsyncpa [#allocation4 + $0x1], 0  ;;  %s1965_s27 = smov 0   ;;  %s1967_s28 = smov 0  }
   0xa   :  { %s1969_s29 = smov 0   ;;  %s1971_s30 = smov 0  }
   0xb LB: > { %s1904_s9 = smov [#allocation5]   ;;  %s1986_s11 = sadd.s32 4294967295, %s1902_s30   ;;  %s1902_s30 = sphi %s1971_s30, %s2377_s30   ;;  %s1898_s29 = sphi %s1969_s29, %s2376_s29   ;;  %s1894_s28 = sphi %s1967_s28, %s2375_s28   ;;  %s1890_s27 = sphi %s1965_s27, %s2374_s27  }
   0xc   : > { %s244_s10 = sshll.u32 %s1904_s9, 4  ;;  %p1185_p0 = scmp.ge.s32.totalorder %s1902_s30, 1  ;;  %s1991_s10 = int_to_ptr.vmem [resolvable:$true] %s244_s10 }
   0xd   : > { %p2349_p1 = scmp.eq.s32.totalorder %s1986_s11, 0  ;;  %p232_p2 = scmp.lt.s32.totalorder %s1902_s30, 3 }
   0xe   : > { %s1905_s13 = smov [#allocation8]   ;;  %s1906_s16 = smov [#allocation11]  }
   0xf   : > { %p1993_p3 = pnand %p1185_p0, %p232_p2  ;;  %s268_s14 = sshll.u32 %s1905_s13, 4  ;;  %s2006_s14 = int_to_ptr.vmem [resolvable:$true] %s268_s14 }
  0x10   : > { %s292_s17 = sshll.u32 %s1906_s16, 4  ;;  %s2355_s1 = sld [smem:[#allocation23_spill]]  ;;  %s2008_s17 = int_to_ptr.vmem [resolvable:$true] %s292_s17 }
  0x11   : > { %s2353_s12 = scalar_select %p1993_p3, 1, 0 }
  0x12   : > { %p1458_p5 = pneg %p1993_p3 }
  0x14   : > { %p2002_p6 = pnand %p1458_p5, %p2349_p1 }
  0x16   : > { %s1594_s20 = scalar_lea.hbm %s2355_s1, 2048  ;;  %p2018_p8 = pneg %p2002_p6 }
  0x17   : > { %p1595_p7 = scmp.ne.s32.totalorder %s2355_s1, %s1594_s20  ;;  %p1601_p11 = scmp.lt.u32.totalorder %s1594_s20, %s2355_s1 }
  0x19   : > { %p1597_p9 = pnand %p2018_p8, %p1595_p7 }
  0x1b   : > { %p1598_p10 = pneg %p1597_p9 }
  0x1d   : > { %p1603_p12 = pnand %p1601_p11, %p1598_p10 }
  0x1f   : > { %1606 = shalt.err (!%p1603_p12)
}
  0x20   : > { %s1607_s26 = scalar_lea.vmem %s1991_s10, 2048  ;;  %p1615_p5 = scmp.lt.s32.totalorder %s1991_s10, %s1991_s10 }
  0x21   : > { %p1608_p13 = scmp.ne.s32.totalorder %s1991_s10, %s1607_s26  ;;  %p1616_p4 = scmp.lt.s32.totalorder %s1607_s26, %s1607_s26 }
  0x23   : > { %p1610_p0 = pnand %p1608_p13, %p2018_p8  ;;  %p1617_p7 = por %p1616_p4, %p1615_p5 }
  0x25   : > { %p1611_p2 = pneg %p1610_p0 }
  0x27   : > { %p1618_p9 = pnand %p1617_p7, %p1611_p2 }
  0x29   : > { %1621 = shalt.err (!%p1618_p9)
}
  0x2a   : > { %s1907_s9 = smov 64   ;;  %s1908_s13 = smov 4  }
  0x2b   : > { %1461 = dma.hbm_to_vmem [thread:$0]  (!%p2002_p6), %s2355_s1, 2048, %s1991_s10, [#allocation6], %s1907_s9, %s1907_s9, %s1908_s13  }
  0x2c   : > { %s1622_s21 = scalar_lea.hbm %s2343_s3, 1024 }
  0x2d   : > { %p1623_p4 = scmp.ne.s32.totalorder %s2343_s3, %s1622_s21  ;;  %p1629_p12 = scmp.lt.u32.totalorder %s1622_s21, %s2343_s3 }
  0x2f   : > { %p1625_p10 = pnand %p1623_p4, %p2018_p8 }
  0x31   : > { %p1626_p11 = pneg %p1625_p10 }
  0x33   : > { %p1631_p13 = pnand %p1629_p12, %p1626_p11 }
  0x35   : > { %1634 = shalt.err (!%p1631_p13)
}
  0x36   : > { %s1635_s10 = scalar_lea.vmem %s2006_s14, 1024  ;;  %p1643_p7 = scmp.lt.s32.totalorder %s2006_s14, %s2006_s14 }
  0x37   : > { %p1636_p0 = scmp.ne.s32.totalorder %s2006_s14, %s1635_s10  ;;  %p1644_p9 = scmp.lt.s32.totalorder %s1635_s10, %s1635_s10 }
  0x39   : > { %p1638_p2 = pnand %p1636_p0, %p2018_p8  ;;  %p1645_p4 = por %p1644_p9, %p1643_p7 }
  0x3b   : > { %p1639_p5 = pneg %p1638_p2 }
  0x3d   : > { %p1646_p10 = pnand %p1645_p4, %p1639_p5 }
  0x3f   : > { %1649 = shalt.err (!%p1646_p10)
}
  0x40   : > { %1467 = dma.hbm_to_vmem [thread:$0]  (!%p2002_p6), %s2343_s3, 1024, %s2006_s14, [#allocation9], %s1907_s9, %s1907_s9, %s1908_s13  }
  0x41   : > { %s1650_s21 = scalar_lea.hbm %s2345_s5, 1024 }
  0x42   : > { %p1651_p11 = scmp.ne.s32.totalorder %s2345_s5, %s1650_s21  ;;  %p1657_p0 = scmp.lt.u32.totalorder %s1650_s21, %s2345_s5 }
  0x44   : > { %p1653_p12 = pnand %p1651_p11, %p2018_p8 }
  0x46   : > { %p1654_p13 = pneg %p1653_p12 }
  0x48   : > { %p1659_p2 = pnand %p1657_p0, %p1654_p13 }
  0x4a   : > { %1662 = shalt.err (!%p1659_p2)
}
  0x4b   : > { %s1663_s14 = scalar_lea.vmem %s2008_s17, 1024  ;;  %p1671_p4 = scmp.lt.s32.totalorder %s2008_s17, %s2008_s17 }
  0x4c   : > { %p1664_p5 = scmp.ne.s32.totalorder %s2008_s17, %s1663_s14  ;;  %p1672_p10 = scmp.lt.s32.totalorder %s1663_s14, %s1663_s14 }
  0x4e   : > { %p1666_p7 = pnand %p1664_p5, %p2018_p8  ;;  %p1673_p11 = por %p1672_p10, %p1671_p4 }
  0x50   : > { %p1667_p9 = pneg %p1666_p7 }
  0x52   : > { %p1674_p12 = pnand %p1673_p11, %p1667_p9 }
  0x54   : > { %1677 = shalt.err (!%p1674_p12)
}
  0x55   : > { %1473 = dma.hbm_to_vmem [thread:$0]  (!%p2002_p6), %s2345_s5, 1024, %s2008_s17, [#allocation12], %s1907_s9, %s1907_s9, %s1908_s13  }
  0x56   : > { %s1909_s18 = smov [#allocation7]   ;;  %s1910_s20 = smov [#allocation10]  }
  0x57   : > { %s258_s19 = sshll.u32 %s1909_s18, 4  ;;  %s282_s21 = sshll.u32 %s1910_s20, 4  ;;  %s259_s19 = int_to_ptr.vmem [resolvable:$true] %s258_s19  ;;  %s283_s21 = int_to_ptr.vmem [resolvable:$true] %s282_s21 }
  0x58   : > { %s1678_s25 = scalar_lea.hbm %s2342_s2, 16 }
  0x59   : > { %p1679_p13 = scmp.ne.s32.totalorder %s2342_s2, %s1678_s25  ;;  %p1685_p5 = scmp.lt.u32.totalorder %s1678_s25, %s2342_s2 }
  0x5b   : > { %p1681_p0 = pnand %p1679_p13, %p2018_p8 }
  0x5d   : > { %p1682_p2 = pneg %p1681_p0 }
  0x5f   : > { %p1687_p7 = pnand %p1685_p5, %p1682_p2 }
  0x61   : > { %1690 = shalt.err (!%p1687_p7)
}
  0x62   : > { %s1691_s17 = scalar_lea.vmem %s259_s19, 16  ;;  %s1698_s9 = scalar_lea.vmem %s259_s19, 32 }
  0x63   : > { %p1692_p9 = scmp.ne.s32.totalorder %s259_s19, %s1691_s17  ;;  %p1699_p11 = scmp.lt.s32.totalorder %s259_s19, %s259_s19 }
  0x64   : > { %p1700_p12 = scmp.lt.s32.totalorder %s1698_s9, %s1691_s17 }
  0x65   : > { %p1694_p4 = pnand %p1692_p9, %p2018_p8 }
  0x66   : > { %p1701_p1 = por %p1700_p12, %p1699_p11 }
  0x67   : > { %p1695_p10 = pneg %p1694_p4 }
  0x69   : > { %p1702_p3 = pnand %p1701_p1, %p1695_p10 }
  0x6b   : > { %1705 = shalt.err (!%p1702_p3)
}
  0x6c   : > { %1464 = dma.hbm_to_vmem [thread:$0]  (!%p2002_p6), %s2342_s2, 16, %s259_s19, [#allocation6]  }
  0x6d   : > { %s1706_s20 = scalar_lea.hbm %s2344_s4, 16 }
  0x6e   : > { %p1707_p13 = scmp.ne.s32.totalorder %s2344_s4, %s1706_s20  ;;  %p1713_p3 = scmp.lt.u32.totalorder %s1706_s20, %s2344_s4 }
  0x70   : > { %p1709_p0 = pnand %p1707_p13, %p2018_p8 }
  0x72   : > { %p1710_p1 = pneg %p1709_p0 }
  0x74   : > { %p1715_p2 = pnand %p1713_p3, %p1710_p1 }
  0x76   : > { %1718 = shalt.err (!%p1715_p2)
}
  0x77   : > { %s1719_s14 = scalar_lea.vmem %s283_s21, 16  ;;  %s1726_s19 = scalar_lea.vmem %s283_s21, 32 }
  0x78   : > { %p1720_p5 = scmp.ne.s32.totalorder %s283_s21, %s1719_s14  ;;  %p1727_p4 = scmp.lt.s32.totalorder %s283_s21, %s283_s21 }
  0x79   : > { %p1728_p10 = scmp.lt.s32.totalorder %s1726_s19, %s1719_s14 }
  0x7a   : > { %p1722_p7 = pnand %p1720_p5, %p2018_p8 }
  0x7b   : > { %p1729_p11 = por %p1728_p10, %p1727_p4 }
  0x7c   : > { %p1723_p9 = pneg %p1722_p7 }
  0x7e   : > { %p1730_p12 = pnand %p1729_p11, %p1723_p9 }
  0x80   : > { %1733 = shalt.err (!%p1730_p12)
}
  0x81   : > { %1470 = dma.hbm_to_vmem [thread:$0]  (!%p2002_p6), %s2344_s4, 16, %s283_s21, [#allocation9]  }
  0x82   : > { %s1911_s9 = smov [#allocation13]   ;;  %s1912_s16 = smov [#allocation14]  }
  0x83   : > { %s306_s13 = sshll.u32 %s1911_s9, 4  ;;  %s317_s1 = sshll.u32 %s1912_s16, 4  ;;  %s307_s13 = int_to_ptr.vmem [resolvable:$true] %s306_s13  ;;  %s318_s1 = int_to_ptr.vmem [resolvable:$true] %s317_s1 }
  0x84   : > { %s1734_s22 = scalar_lea.hbm %s2346_s6, 16 }
  0x85   : > { %p1735_p13 = scmp.ne.s32.totalorder %s2346_s6, %s1734_s22  ;;  %p1741_p3 = scmp.lt.u32.totalorder %s1734_s22, %s2346_s6 }
  0x87   : > { %p1737_p0 = pnand %p1735_p13, %p2018_p8 }
  0x89   : > { %p1738_p1 = pneg %p1737_p0 }
  0x8b   : > { %p1743_p2 = pnand %p1741_p3, %p1738_p1 }
  0x8d   : > { %1746 = shalt.err (!%p1743_p2)
}
  0x8e   : > { %s1747_s21 = scalar_lea.vmem %s307_s13, 16  ;;  %s1754_s19 = scalar_lea.vmem %s307_s13, 32 }
  0x8f   : > { %p1748_p5 = scmp.ne.s32.totalorder %s307_s13, %s1747_s21  ;;  %p1755_p4 = scmp.lt.s32.totalorder %s307_s13, %s307_s13 }
  0x90   : > { %p1756_p10 = scmp.lt.s32.totalorder %s1754_s19, %s1747_s21 }
  0x91   : > { %p1750_p7 = pnand %p1748_p5, %p2018_p8 }
  0x92   : > { %p1757_p11 = por %p1756_p10, %p1755_p4 }
  0x93   : > { %p1751_p9 = pneg %p1750_p7 }
  0x95   : > { %p1758_p12 = pnand %p1757_p11, %p1751_p9 }
  0x97   : > { %1761 = shalt.err (!%p1758_p12)
}
  0x98   : > { %1476 = dma.hbm_to_vmem [thread:$0]  (!%p2002_p6), %s2346_s6, 16, %s307_s13, [#allocation12]  }
  0x99   : > { %s1762_s18 = scalar_lea.hbm %s2347_s7, 16 }
  0x9a   : > { %p1763_p13 = scmp.ne.s32.totalorder %s2347_s7, %s1762_s18  ;;  %p1769_p3 = scmp.lt.u32.totalorder %s1762_s18, %s2347_s7 }
  0x9c   : > { %p1765_p0 = pnand %p1763_p13, %p2018_p8 }
  0x9e   : > { %p1766_p1 = pneg %p1765_p0 }
  0xa0   : > { %p1771_p2 = pnand %p1769_p3, %p1766_p1 }
  0xa2   : > { %1774 = shalt.err (!%p1771_p2)
}
  0xa3   : > { %s1775_s26 = scalar_lea.vmem %s318_s1, 16  ;;  %s1782_s13 = scalar_lea.vmem %s318_s1, 32 }
  0xa4   : > { %p1776_p5 = scmp.ne.s32.totalorder %s318_s1, %s1775_s26  ;;  %p1783_p4 = scmp.lt.s32.totalorder %s318_s1, %s318_s1 }
  0xa5   : > { %p1784_p10 = scmp.lt.s32.totalorder %s1782_s13, %s1775_s26 }
  0xa6   : > { %p1778_p7 = pnand %p1776_p5, %p2018_p8 }
  0xa7   : > { %p1785_p11 = por %p1784_p10, %p1783_p4 }
  0xa8   : > { %p1779_p9 = pneg %p1778_p7 }
  0xaa   : > { %p1786_p12 = pnand %p1785_p11, %p1779_p9 }
  0xac   : > { %1789 = shalt.err (!%p1786_p12)
}
  0xad   : > { %1479 = dma.hbm_to_vmem [thread:$0]  (!%p2002_p6), %s2347_s7, 16, %s318_s1, [#allocation15]  }
  0xae   : > { %s1184_s23 = sadd.s32 4294967294, %s1902_s30   ;;  %s2168_s15 = sadd.s32 1, %s1902_s30  }
  0xaf   : > { %s35_s19 = sadd.s32 1, %s1898_s29  ;;  %s32_s10 = ssub.s32 %s1902_s30, %s2168_s15 }
  0xb0   : > { %p42_p8 = scmp.ne.s32.totalorder %s1898_s29, %s1894_s28  ;;  %p33_p13 = scmp.eq.s32.totalorder %s32_s10, 0 }
  0xb1   : > { %p43_p0 = scmp.eq.s32.totalorder %s1902_s30, 0  ;;  %p48_p1 = scmp.ne.s32.totalorder %s1894_s28, %s1890_s27 }
  0xb2   : > { %p219_p3 = scmp.eq.s32.totalorder %s1986_s11, 1  ;;  %p2357_p5 = scmp.eq.s32.totalorder %s1986_s11, 0 }
  0xb3   : > { %s2180_s17 = scalar_select %p33_p13, %s1898_s29, %s35_s19  }
  0xb4   : > { %p44_p2 = por %p43_p0, %p42_p8  ;;  %p2184_p7 = por %p2357_p5, %p48_p1 }
  0xb5   : > { %p2188_p6 = por %p219_p3, %p42_p8  ;;  %p225_p9 = scmp.eq.s32.totalorder %s1184_s23, 1 }
  0xb6   : > { %p1495_p4 = scmp.lt.s32.totalorder %s1902_s30, 2  ;;  %s328_s16 = sand.u32 1, %s1898_s29  }
  0xb7   : > { %s2359_s1 = scalar_select %p2188_p6, 1, 0 }
  0xb8   : > { %p2194_p10 = por %p225_p9, %p48_p1  ;;  %s1194_s20 = sshll.u32 %s328_s16, 6 }
  0xb9   : > { %s1265_s22 = sshll.u32 %s1902_s30, 10  ;;  %s332_s13 = scalar_lea.vmem [#allocation2], %s1194_s20 }
  0xba   : > { %s2360_s18 = scalar_select %p2194_p10, 1, 0 }
  0xbb   : > { %s2202_s26 = scalar_lea.hbm %s2340_s0, %s1265_s22  ;;  %s340_s14 = sshll.u32 %s332_s13, 4  ;;  %s2208_s14 = int_to_ptr.vmem [resolvable:$true] %s340_s14 }
  0xbc   : > { %p2204_p11 = pnand %p1495_p4, %p44_p2  ;;  %s2210_s23 = scalar_lea.sflag [#allocation3], %s328_s16 }
  0xbd   : > { %s1790_s19 = scalar_lea.hbm %s2202_s26, 1024  ;;  %s1795_s22 = scalar_lea.hbm %s2340_s0, 2048 }
  0xbe   : > { %p1791_p12 = scmp.ne.s32.totalorder %s2202_s26, %s1790_s19  ;;  %p1792_p8 = pneg %p2204_p11 }
  0xbf   : > { %p1796_p1 = scmp.lt.u32.totalorder %s2202_s26, %s2340_s0  ;;  %p1797_p3 = scmp.lt.u32.totalorder %s1795_s22, %s1790_s19 }
  0xc0   : > { %p1793_p13 = pnand %p1792_p8, %p1791_p12  ;;  %p1799_p5 = scmp.lt.u32.totalorder %s1790_s19, %s2202_s26 }
  0xc1   : > { %p1798_p2 = por %p1797_p3, %p1796_p1 }
  0xc2   : > { %p1794_p0 = pneg %p1793_p13 }
  0xc3   : > { %p1800_p9 = por %p1799_p5, %p1798_p2 }
  0xc5   : > { %p1801_p4 = pnand %p1800_p9, %p1794_p0 }
  0xc7   : > { %1804 = shalt.err (!%p1801_p4)
}
  0xc8   : > { %s1805_s16 = scalar_lea.vmem %s2208_s14, 1024  ;;  %s1913_s13 = smov [#allocation2]  }
  0xc9   : > { %p1806_p12 = scmp.ne.s32.totalorder %s2208_s14, %s1805_s16  ;;  %s1810_s10 = sshll.u32 %s1913_s13, 4  ;;  %s1811_s10 = int_to_ptr.vmem [resolvable:$false] %s1810_s10 }
  0xca   : > { %s1812_s20 = scalar_lea.vmem %s1811_s10, 2048  ;;  %p1813_p6 = scmp.lt.s32.totalorder %s2208_s14, %s1811_s10 }
  0xcb   : > { %p1808_p13 = pnand %p1806_p12, %p1792_p8  ;;  %p1814_p1 = scmp.lt.s32.totalorder %s1812_s20, %s1805_s16 }
  0xcd   : > { %p1809_p10 = pneg %p1808_p13  ;;  %p1815_p3 = por %p1814_p1, %p1813_p6 }
  0xcf   : > { %p1816_p2 = pnand %p1815_p3, %p1809_p10 }
  0xd1   : > { %1819 = shalt.err (!%p1816_p2)
}
  0xd2   : > { %s1914_s19 = smov 128   ;;  %s1915_s22 = smov 8  }
  0xd3   : > { %1483 = dma.hbm_to_vmem [thread:$0]  (!%p2204_p11), %s2202_s26, 1024, %s2208_s14, %s2210_s23, %s1914_s19, %s1914_s19, %s1915_s22  }
  0xd4   : > { %p2362_p8 = scmp.ne.s32.totalorder %s2353_s12, 0 }
  0xd5   : > { %s2241_s24 = sand.u32 (!%p2362_p8), 1, %s1894_s28  }
  0xd6   : > { %352 = sbr.rel (%p2362_p8) target bundleno = 974 (0x3ce), region = 52  ;;  %s1199_s25 = sshll.u32 (!%p2362_p8), %s2241_s24, 6 }
  0xd7   : > { %s355_s16 = scalar_lea.sflag (!%p2362_p8), [#allocation3], %s2241_s24  ;;  %s2245_s13 = scalar_lea.vmem (!%p2362_p8), [#allocation2], %s1199_s25 }
  0xdd   : > { %1865 = dma.done.wait (%p2184_p7), %s355_s16, 1024  }
  0xde   : > { %1867 = vsyncadd (%p2184_p7), %s355_s16, 4294966272  ;;  %p2363_p6 = scmp.eq.s32.totalorder %s1986_s11, 0 }
  0xe0   : > { %1869 = dma.done.wait (%p2363_p6), [#allocation6], 2064   ;;  %p2364_p10 = pmov %p2363_p6 }
  0xe1   : > { %p2365_p11 = pmov %p2363_p6 }
  0xe2   : > { %1871 = vsyncadd (%p2364_p10), [#allocation6], 4294965232 }
  0xe3   : > { %1873 = dma.done.wait (%p2365_p11), [#allocation9], 1040   ;;  %p2366_p0 = pmov %p2363_p6 }
  0xe5   : > { %1875 = vsyncadd (%p2366_p0), [#allocation9], 4294966256  ;;  %p2367_p5 = pmov %p2366_p0 }
  0xe6   : > { %p2368_p9 = pmov %p2366_p0 }
  0xe7   : > { %1877 = dma.done.wait (%p2367_p5), [#allocation12], 1040  }
  0xe8   : > { %1879 = vsyncadd (%p2368_p9), [#allocation12], 4294966256  ;;  %p2369_p7 = pmov %p2366_p0 }
  0xe9   : > { %p2370_p4 = pmov %p2366_p0 }
  0xea   : > { %1881 = dma.done.wait (%p2369_p7), [#allocation15], 16  }
  0xeb   : > { %1883 = vsyncadd (%p2370_p4), [#allocation15], 4294967280  ;;  %v1550_v0 = vld [vmem:[#allocation5 + $0x40] sm:$0xff]   ;;  %v1552_v2 = vld [vmem:[#allocation5 + $0x48] sm:$0xff]   ;;  %s1207_s12 = sshll.u32 %s2241_s24, 5  ;;  %s1274_s14 = sshll.u32 %s1986_s11, 9 }
  0xec   : > { %v1551_v1 = vld [vmem:[#allocation5] sm:$0xff]   ;;  %1298 = vmatprep.subr.bf16.mxu0 %v1550_v0  ;;  %v1553_v3 = vld [vmem:[#allocation5 + $0x8] sm:$0xff]   ;;  %v1554_v4 = vld [vmem:[#allocation5 + $0x50] sm:$0xff]   ;;  %s418_s9 = scalar_lea.vmem [#allocation16], %s1207_s12  ;;  %s2296_s10 = scalar_lea.hbm %s2348_s8, %s1274_s14 }
  0xed   : > { %1299 = vmatpush3.bf16.msra.mxu0 %v1551_v1  ;;  %v1555_v5 = vld [vmem:[#allocation5 + $0x10] sm:$0xff]   ;;  %v1556_v6 = vld [vmem:[#allocation5 + $0x58] sm:$0xff]   ;;  %v1558_v8 = vld [vmem:[#allocation5 + $0x60] sm:$0xff]   ;;  %s1044_s26 = sshll.u32 %s418_s9, 4  ;;  %s1031_s11 = scalar_lea.sflag [#allocation4], %s2241_s24  ;;  %s2287_s26 = int_to_ptr.vmem [resolvable:$true] %s1044_s26 }
  0xee   : > { %1300 = vmatprep.subr.bf16.mxu0 %v1552_v2  ;;  %v1557_v7 = vld [vmem:[#allocation5 + $0x18] sm:$0xff]   ;;  %v1559_v9 = vld [vmem:[#allocation5 + $0x20] sm:$0xff]   ;;  %v1560_v10 = vld [vmem:[#allocation5 + $0x68] sm:$0xff]   ;;  %s1820_s20 = scalar_lea.vmem %s2287_s26, 512  ;;  %p2371_p13 = scmp.ne.s32.totalorder %s2359_s1, 0 }
  0xef   : > { %v1568_v11 = vld [vmem:[%s2245_s13 + $0x4] ss:$8 sps:$4 sm:$0xff]   ;;  %v1562_v13 = vld [vmem:[#allocation5 + $0x70] sm:$0xff]   ;;  %v1564_v15 = vld [vmem:[#allocation5 + $0x78] sm:$0xff]   ;;  %p1821_p12 = scmp.ne.s32.totalorder %s2287_s26, %s1820_s20  ;;  %s1917_s19 = smov [#allocation16]  }
  0xf0   : > { %v1561_v12 = vld [vmem:[#allocation5 + $0x28] sm:$0xff]   ;;  %637 = vmatprep.mubr.bf16.mxu0 %v1568_v11  ;;  %v1563_v14 = vld [vmem:[#allocation5 + $0x30] sm:$0xff]   ;;  %v1565_v19 = vld [vmem:[#allocation5 + $0x38] sm:$0xff]   ;;  %s1824_s22 = sshll.u32 %s1917_s19, 4  ;;  %s1825_s22 = int_to_ptr.vmem [resolvable:$false] %s1824_s22 }
  0xf1   : > { %1301 = vmatpush3.bf16.msra.mxu0 %v1553_v3  ;;  %v1578_v16 = vld [vmem:[#allocation8] sm:$0xff]   ;;  %v1579_v17 = vld [vmem:[#allocation8 + $0x8] sm:$0xff]   ;;  %v1580_v18 = vld [vmem:[#allocation8 + $0x10] sm:$0xff]   ;;  %p1822_p1 = pnand %p1821_p12, %p2371_p13  ;;  %s1826_s25 = scalar_lea.vmem %s1825_s22, 1024 }
  0xf2   : > { %1302 = vmatprep.subr.bf16.mxu0 %v1554_v4  ;;  %1362 = vmatprep.subr.bf16.mxu1 %v1578_v16  ;;  %v1566_v20 = vld [vmem:[%s2245_s13] ss:$8 sps:$4 sm:$0xff]   ;;  %v1569_v21 = vld [vmem:[%s2245_s13 + $0x14] ss:$8 sps:$4 sm:$0xff]   ;;  %v1571_v22 = vld [vmem:[%s2245_s13 + $0x10] ss:$8 sps:$4 sm:$0xff]   ;;  %p1827_p2 = scmp.lt.s32.totalorder %s2287_s26, %s1825_s22  ;;  %p1828_p8 = scmp.lt.s32.totalorder %s1826_s25, %s1820_s20 }
  0xf3   : > { %1363 = vmatpush3.bf16.msra.mxu1 %v1578_v16  ;;  %v1572_v23 = vld [vmem:[%s2245_s13 + $0x24] ss:$8 sps:$4 sm:$0xff]   ;;  %v1574_v24 = vld [vmem:[%s2245_s13 + $0x20] ss:$8 sps:$4 sm:$0xff]   ;;  %v1575_v25 = vld [vmem:[%s2245_s13 + $0x34] ss:$8 sps:$4 sm:$0xff]   ;;  %p1823_p3 = pneg %p1822_p1 }
  0xf4   : > { %1364 = vmatprep.subr.bf16.mxu1 %v1579_v17  ;;  %v1577_v26 = vld [vmem:[%s2245_s13 + $0x30] ss:$8 sps:$4 sm:$0xff]   ;;  %v1582_v28 = vld [vmem:[#allocation8 + $0x20] sm:$0xff]   ;;  %v1208_v40 = vld [vmem:[#allocation7] ss:$0 sm:$0xff]  ;;  %p1829_p6 = por %p1828_p8, %p1827_p2 }
  0xf5   : > { %1303 = vmatpush3.bf16.msra.mxu0 %v1555_v5  ;;  %v1581_v27 = vld [vmem:[#allocation8 + $0x18] sm:$0xff]   ;;  %v1583_v29 = vld [vmem:[#allocation8 + $0x28] sm:$0xff]   ;;  %v1584_v30 = vld [vmem:[#allocation8 + $0x30] sm:$0xff]  }
  0xf6   : > { %1304 = vmatprep.subr.bf16.mxu0 %v1556_v6  ;;  %v1585_v31 = vld [vmem:[#allocation8 + $0x38] sm:$0xff]   ;;  %v1586_v32 = vld [vmem:[#allocation11] sm:$0xff]   ;;  %v1587_v33 = vld [vmem:[#allocation11 + $0x8] sm:$0xff]   ;;  %p1830_p10 = pnand %p1829_p6, %p1823_p3 }
  0xf7   : > { %1365 = vmatpush3.bf16.msra.mxu1 %v1579_v17  ;;  %v1588_v34 = vld [vmem:[#allocation11 + $0x10] sm:$0xff]   ;;  %v1589_v35 = vld [vmem:[#allocation11 + $0x18] sm:$0xff]   ;;  %v2275_v36 = vld [vmem:[#allocation11 + $0x20] sm:$0xff]  }
  0xf8   : > { %1366 = vmatprep.subr.bf16.mxu1 %v1580_v18  ;;  %v1591_v37 = vld [vmem:[#allocation11 + $0x28] sm:$0xff]  }
  0xf9   : > { %1305 = vmatpush3.bf16.msra.mxu0 %v1557_v7 }
  0xfa   : > { %1306 = vmatprep.subr.bf16.mxu0 %v1558_v8 }
  0xfb   : > { %1367 = vmatpush3.bf16.msra.mxu1 %v1580_v18 }
  0xfc   : > { %1368 = vmatprep.subr.bf16.mxu1 %v1581_v27 }
  0xfd   : > { %1307 = vmatpush3.bf16.msra.mxu0 %v1559_v9 }
  0xfe   : > { %1308 = vmatprep.subr.bf16.mxu0 %v1560_v10 }
  0xff   : > { %1369 = vmatpush3.bf16.msra.mxu1 %v1581_v27 }
 0x100   : > { %1370 = vmatprep.subr.bf16.mxu1 %v1582_v28 }
 0x101   : > { %1309 = vmatpush3.bf16.msra.mxu0 %v1561_v12 }
 0x102   : > { %1310 = vmatprep.subr.bf16.mxu0 %v1562_v13 }
 0x103   : > { %1371 = vmatpush3.bf16.msra.mxu1 %v1582_v28 }
 0x104   : > { %1372 = vmatprep.subr.bf16.mxu1 %v1583_v29 }
 0x105   : > { %1311 = vmatpush3.bf16.msra.mxu0 %v1563_v14 }
 0x106   : > { %1312 = vmatprep.subr.bf16.mxu0 %v1564_v15 }
 0x107   : > { %1373 = vmatpush3.bf16.msra.mxu1 %v1583_v29 }
 0x108   : > { %1374 = vmatprep.subr.bf16.mxu1 %v1584_v30 }
 0x109   : > { %1313 = vmatpush3.bf16.msra.mxu0 %v1565_v19  ;;  %v1592_v19 = vld [vmem:[#allocation11 + $0x30] sm:$0xff]  }
 0x10a   : > { %1386 = vmatprep.subr.bf16.mxu0 %v1586_v32 }
 0x10b   : > { %1375 = vmatpush3.bf16.msra.mxu1 %v1584_v30 }
 0x10c   : > { %638 = vmatmul.mubr.bf16.vlgmr.msra.gmra.mrb[0].mxu0 %v1566_v20  ;;  %1376 = vmatprep.subr.bf16.mxu1 %v1585_v31  ;;  %v1593_v20 = vld [vmem:[#allocation11 + $0x38] sm:$0xff]  }
 0x10d   : > { %645 = vmatprep.mubr.bf16.mxu0 %v1569_v21  ;;  %1387 = vmatpush3.bf16.msra.mxu0 %v1586_v32  ;;  %v1233_v21 = vld [vmem:[#allocation10] ss:$0 sm:$0xff] }
 0x10e   : > { %1388 = vmatprep.subr.bf16.mxu0 %v1587_v33 }
 0x10f   : > { %1377 = vmatpush3.bf16.msra.mxu1 %v1585_v31 }
 0x110   : > { %1410 = vmatprep.subr.bf16.mxu1 %v1586_v32 }
 0x111   : > { %1389 = vmatpush3.bf16.msra.mxu0 %v1587_v33 }
 0x112   : > { %1390 = vmatprep.subr.bf16.mxu0 %v1588_v34 }
 0x114   : > { %646 = vmatmul.mubr.bf16.gmra.mrb[4].mxu0 %v1571_v22 }
 0x115   : > { %653 = vmatprep.mubr.bf16.mxu0 %v1572_v23  ;;  %1391 = vmatpush3.bf16.msra.mxu0 %v1588_v34 }
 0x116   : > { %1392 = vmatprep.subr.bf16.mxu0 %v1589_v35 }
 0x119   : > { %1393 = vmatpush3.bf16.msra.mxu0 %v1589_v35 }
 0x11a   : > { %1394 = vmatprep.subr.bf16.mxu0 %v2275_v36 }
 0x11c   : > { %654 = vmatmul.mubr.bf16.gmra.mrb[8].mxu0 %v1574_v24 }
 0x11d   : > { %661 = vmatprep.mubr.bf16.mxu0 %v1575_v25  ;;  %1395 = vmatpush3.bf16.msra.mxu0 %v2275_v36 }
 0x11e   : > { %1396 = vmatprep.subr.bf16.mxu0 %v1591_v37 }
 0x121   : > { %1397 = vmatpush3.bf16.msra.mxu0 %v1591_v37 }
 0x122   : > { %1398 = vmatprep.subr.bf16.mxu0 %v1592_v19 }
 0x124   : > { %662 = vmatmul.mubr.bf16.gmra.mrb[12].mxu0 %v1577_v26 }
 0x125   : > { %1399 = vmatpush3.bf16.msra.mxu0 %v1592_v19 }
 0x126   : > { %1400 = vmatprep.subr.bf16.mxu0 %v1593_v20 }
 0x129   : > { %1401 = vmatpush3.bf16.msra.mxu0 %v1593_v20 }
 0x1df   : > { %v1314_v38 = vpop.f32.mrb[0].mxu0 }
 0x1e0   : > { %v1315_v39 = vpop.f32.mrb[1].mxu0 }
 0x1e1   : > { %v1316_v41 = vadd.f32 %v1315_v39, %v1314_v38  ;;  %v1317_v42 = vpop.f32.mrb[2].mxu0 }
 0x1e2   : > { %v1318_v43 = vpop.f32.mrb[3].mxu0 }
 0x1e3   : > { %v1319_v44 = vadd.f32 %v1318_v43, %v1317_v42  ;;  %v640_v45 = vadd.f32 %v1316_v41, %v1208_v40 }
 0x1e5   : > { %v643_v46 = vadd.f32 %v1319_v44, %v1208_v40  ;;  %v670_v48 = vmax.f32 %v640_v45, 0.0 }
 0x1e7   : > { %v1320_v47 = vpop.f32.mrb[4].mxu0  ;;  %v671_v49 = vmax.f32 %v643_v46, 0.0 }
 0x1e8   : > { %v1321_v50 = vpop.f32.mrb[5].mxu0 }
 0x1e9   : > { %v1322_v51 = vadd.f32 %v1321_v50, %v1320_v47  ;;  %v1323_v52 = vpop.f32.mrb[6].mxu0  ;;  %v678_v53 = vpack.c.bf16 %v671_v49, %v670_v48  ;;  %v977_v50 = vlaneseq }
 0x1ea   : > { %v1324_v54 = vpop.f32.mrb[7].mxu0 }
 0x1eb   : > { %v648_v55 = vadd.f32 %v1322_v51, %v1208_v40  ;;  %v1325_v56 = vadd.f32 %v1324_v54, %v1323_v52  ;;  %1378 = vmatprep.mubr.bf16.mxu1 %v678_v53  ;;  %v966_v51 = vld [vmem:[#allocation14] sm:$0x1]  ;;  %v978_v52 = vshrl.u32 %v977_v50, 7  ;;  %v1916_v54 = vmov 0  }
 0x1ec   : > { %vm967_vm0 = vcmp.gt.f32.partialorder %v966_v51, 0.5 }
 0x1ed   : > { %v651_v57 = vadd.f32 %v1325_v56, %v1208_v40  ;;  %v672_v58 = vmax.f32 %v648_v55, 0.0  ;;  %v979_v53 = vsub.s32 0, %v978_v52  ;;  %v976_v55 = vsel %vm967_vm0, 1, %v1916_v54  ;;  %v1242_v56 = vld [vmem:[#allocation13] ss:$0 sm:$0xff] }
 0x1ef   : > { %v673_v59 = vmax.f32 %v651_v57, 0.0  ;;  %v1326_v60 = vpop.f32.mrb[8].mxu0 }
 0x1f0   : > { %v1327_v61 = vpop.f32.mrb[9].mxu0 }
 0x1f1   : > { %v1328_v62 = vadd.f32 %v1327_v61, %v1326_v60  ;;  %v1329_v63 = vpop.f32.mrb[10].mxu0  ;;  %v679_v0 = vpack.c.bf16 %v673_v59, %v672_v58  ;;  %v980_v58 = vrot.slane %v976_v55, %v979_v53 }
 0x1f2   : > { %v1330_v1 = vpop.f32.mrb[11].mxu0 }
 0x1f3   : > { %v656_v2 = vadd.f32 %v1328_v62, %v1208_v40  ;;  %v1331_v3 = vadd.f32 %v1330_v1, %v1329_v63  ;;  %1379 = vmatmul.mubr.bf16.vlgmr.msra.gmra.mrb[0].mxu1 %v679_v0  ;;  %vm981_vm1 = vcmp.eq.s32.totalorder %v980_v58, 1 }
 0x1f4   : > { %1418 = vmatpush3.bf16.msra.mxu1 %v1586_v32 }
 0x1f5   : > { %v659_v4 = vadd.f32 %v1331_v3, %v1208_v40  ;;  %1411 = vmatprep.subr.bf16.mxu1 %v1587_v33  ;;  %v674_v5 = vmax.f32 %v656_v2, 0.0 }
 0x1f7   : > { %v675_v6 = vmax.f32 %v659_v4, 0.0  ;;  %v1332_v7 = vpop.f32.mrb[12].mxu0 }
 0x1f8   : > { %v1333_v8 = vpop.f32.mrb[13].mxu0  ;;  %1419 = vmatpush3.bf16.msra.mxu1 %v1587_v33 }
 0x1f9   : > { %v1334_v9 = vadd.f32 %v1333_v8, %v1332_v7  ;;  %v1335_v10 = vpop.f32.mrb[14].mxu0  ;;  %v680_v11 = vpack.c.bf16 %v675_v6, %v674_v5  ;;  %1412 = vmatprep.subr.bf16.mxu1 %v1588_v34 }
 0x1fa   : > { %v1336_v12 = vpop.f32.mrb[15].mxu0 }
 0x1fb   : > { %v664_v13 = vadd.f32 %v1334_v9, %v1208_v40  ;;  %v1337_v14 = vadd.f32 %v1336_v12, %v1335_v10  ;;  %1382 = vmatprep.mubr.bf16.mxu1 %v680_v11 }
 0x1fc   : > { %1420 = vmatpush3.bf16.msra.mxu1 %v1588_v34 }
 0x1fd   : > { %v667_v15 = vadd.f32 %v1337_v14, %v1208_v40  ;;  %1413 = vmatprep.subr.bf16.mxu1 %v1589_v35  ;;  %v676_v16 = vmax.f32 %v664_v13, 0.0 }
 0x1ff   : > { %v677_v17 = vmax.f32 %v667_v15, 0.0 }
 0x200   : > { %1421 = vmatpush3.bf16.msra.mxu1 %v1589_v35 }
 0x201   : > { %v681_v18 = vpack.c.bf16 %v677_v17, %v676_v16  ;;  %1414 = vmatprep.subr.bf16.mxu1 %v2275_v36 }
 0x203   : > { %1383 = vmatmul.mubr.bf16.gmra.mrb[4].mxu1 %v681_v18 }
 0x204   : > { %1422 = vmatpush3.bf16.msra.mxu1 %v2275_v36 }
 0x205   : > { %1415 = vmatprep.subr.bf16.mxu1 %v1591_v37 }
 0x208   : > { %1423 = vmatpush3.bf16.msra.mxu1 %v1591_v37 }
 0x209   : > { %1416 = vmatprep.subr.bf16.mxu1 %v1592_v19 }
 0x20c   : > { %1424 = vmatpush3.bf16.msra.mxu1 %v1592_v19 }
 0x20d   : > { %1417 = vmatprep.subr.bf16.mxu1 %v1593_v20 }
 0x210   : > { %1425 = vmatpush3.bf16.msra.mxu1 %v1593_v20 }
 0x2c6   : > { %v1380_v22 = vpop.f32.mrb[0].mxu1 }
 0x2c7   : > { %v796_v23 = vadd.f32 %v1380_v22, %v1233_v21  ;;  %v787_v24 = vpop.f32.mrb[1].mxu1 }
 0x2c8   : > { %v788_v25 = vadd.f32 %v1233_v21, %v787_v24  ;;  %v1381_v26 = vpop.f32.mrb[2].mxu1 }
 0x2c9   : > { %v799_v27 = vadd.f32 %v1381_v26, %v1233_v21  ;;  %v790_v28 = vpop.f32.mrb[3].mxu1  ;;  %v820_v30 = vmax.f32 %v796_v23, 0.0 }
 0x2ca   : > { %v791_v29 = vadd.f32 %v1233_v21, %v790_v28  ;;  %v818_v32 = vmax.f32 %v788_v25, 0.0 }
 0x2cb   : > { %v821_v31 = vmax.f32 %v799_v27, 0.0 }
 0x2cc   : > { %v819_v33 = vmax.f32 %v791_v29, 0.0 }
 0x2cd   : > { %v827_v34 = vpack.c.bf16 %v821_v31, %v820_v30 }
 0x2ce   : > { %v826_v35 = vpack.c.bf16 %v819_v33, %v818_v32 }
 0x2d0   : > { %1402 = vmatprep.mubr.bf16.mxu0 %v826_v35 }
 0x2d1   : > { %1403 = vmatmul.mubr.bf16.vlgmr.msra.gmra.mrb[16].mxu0 %v827_v34 }
 0x2d6   : > { %v1384_v36 = vpop.f32.mrb[4].mxu1 }
 0x2d7   : > { %v812_v37 = vadd.f32 %v1384_v36, %v1233_v21  ;;  %v803_v38 = vpop.f32.mrb[5].mxu1 }
 0x2d8   : > { %v804_v39 = vadd.f32 %v1233_v21, %v803_v38  ;;  %v1385_v40 = vpop.f32.mrb[6].mxu1 }
 0x2d9   : > { %v815_v41 = vadd.f32 %v1385_v40, %v1233_v21  ;;  %v806_v42 = vpop.f32.mrb[7].mxu1  ;;  %v824_v44 = vmax.f32 %v812_v37, 0.0 }
 0x2da   : > { %v807_v43 = vadd.f32 %v1233_v21, %v806_v42  ;;  %v822_v46 = vmax.f32 %v804_v39, 0.0 }
 0x2db   : > { %v825_v45 = vmax.f32 %v815_v41, 0.0 }
 0x2dc   : > { %v823_v47 = vmax.f32 %v807_v43, 0.0 }
 0x2dd   : > { %v829_v48 = vpack.c.bf16 %v825_v45, %v824_v44 }
 0x2de   : > { %v828_v49 = vpack.c.bf16 %v823_v47, %v822_v46 }
 0x2e0   : > { %1406 = vmatprep.mubr.bf16.mxu1 %v828_v49 }
 0x2e1   : > { %1407 = vmatmul.mubr.bf16.vlgmr.msra.gmra.mrb[8].mxu1 %v829_v48 }
 0x3a4   : > { %v1404_v57 = vpop.f32.mrb[16].mxu0 }
 0x3a5   : > { %v944_v59 = vadd.f32 %v1404_v57, %v1242_v56  ;;  %v935_v60 = vpop.f32.mrb[17].mxu0 }
 0x3a6   : > { %v936_v61 = vadd.f32 %v1242_v56, %v935_v60  ;;  %v1405_v62 = vpop.f32.mrb[18].mxu0 }
 0x3a7   : > { %v970_v63 = vmax.f32 %v944_v59, 0.0  ;;  %v947_v0 = vadd.f32 %v1405_v62, %v1242_v56  ;;  %v938_v1 = vpop.f32.mrb[19].mxu0 }
 0x3a8   : > { %v968_v2 = vmax.f32 %v936_v61, 0.0  ;;  %v939_v3 = vadd.f32 %v1242_v56, %v938_v1 }
 0x3a9   : > { %v971_v4 = vmax.f32 %v947_v0, 0.0  ;;  %v984_v6 = vsel %vm981_vm1, %v970_v63, %v944_v59 }
 0x3aa   : > { %v969_v5 = vmax.f32 %v939_v3, 0.0  ;;  %v982_v8 = vsel %vm981_vm1, %v968_v2, %v936_v61 }
 0x3ab   : > { %v985_v7 = vsel %vm981_vm1, %v971_v4, %v947_v0 }
 0x3ac   : > { %v1283_v9 = vpack.c.bf16 %v985_v7, %v984_v6  ;;  %v983_v10 = vsel %vm981_vm1, %v969_v5, %v939_v3 }
 0x3ad   : > { %v1278_v11 = vpack.c.bf16 %v983_v10, %v982_v8 }
 0x3ae   : > { %1295 = vst [vmem:[%s418_s9 + $0x8] sm:$0xff] %v1283_v9  }
 0x3af   : > { %1279 = vst [vmem:[%s418_s9] sm:$0xff] %v1278_v11  }
 0x3b4   : > { %v1408_v12 = vpop.f32.mrb[8].mxu1 }
 0x3b5   : > { %v960_v13 = vadd.f32 %v1408_v12, %v1242_v56  ;;  %v951_v14 = vpop.f32.mrb[9].mxu1 }
 0x3b6   : > { %v952_v15 = vadd.f32 %v1242_v56, %v951_v14  ;;  %v1409_v16 = vpop.f32.mrb[10].mxu1 }
 0x3b7   : > { %v974_v17 = vmax.f32 %v960_v13, 0.0  ;;  %v963_v18 = vadd.f32 %v1409_v16, %v1242_v56  ;;  %v954_v19 = vpop.f32.mrb[11].mxu1 }
 0x3b8   : > { %v972_v20 = vmax.f32 %v952_v15, 0.0  ;;  %v955_v21 = vadd.f32 %v1242_v56, %v954_v19 }
 0x3b9   : > { %v975_v22 = vmax.f32 %v963_v18, 0.0  ;;  %v988_v24 = vsel %vm981_vm1, %v974_v17, %v960_v13 }
 0x3ba   : > { %v973_v23 = vmax.f32 %v955_v21, 0.0  ;;  %v986_v26 = vsel %vm981_vm1, %v972_v20, %v952_v15 }
 0x3bb   : > { %v989_v25 = vsel %vm981_vm1, %v975_v22, %v963_v18 }
 0x3bc   : > { %v1293_v27 = vpack.c.bf16 %v989_v25, %v988_v24  ;;  %v987_v28 = vsel %vm981_vm1, %v973_v23, %v955_v21 }
 0x3bd   : > { %v1288_v29 = vpack.c.bf16 %v987_v28, %v986_v26 }
 0x3be   : > { %1297 = vst [vmem:[%s418_s9 + $0x18] sm:$0xff] %v1293_v27  }
 0x3bf   : > { %1296 = vst [vmem:[%s418_s9 + $0x10] sm:$0xff] %v1288_v29  }
 0x3c0   : > { %1833 = shalt.err (!%p1830_p10)
}
 0x3c1   : > { %s1834_s16 = scalar_lea.hbm %s2296_s10, 512  ;;  %s1838_s9 = scalar_lea.hbm %s2348_s8, 1024 }
 0x3c2   : > { %p1835_p11 = scmp.ne.s32.totalorder %s2296_s10, %s1834_s16  ;;  %p1839_p9 = scmp.lt.u32.totalorder %s2296_s10, %s2348_s8 }
 0x3c3   : > { %p1840_p7 = scmp.lt.u32.totalorder %s1838_s9, %s1834_s16  ;;  %p1842_p12 = scmp.lt.u32.totalorder %s1834_s16, %s2296_s10 }
 0x3c4   : > { %p1836_p0 = pnand %p1835_p11, %p2371_p13 }
 0x3c5   : > { %p1841_p4 = por %p1840_p7, %p1839_p9 }
 0x3c6   : > { %p1837_p5 = pneg %p1836_p0 }
 0x3c7   : > { %p1843_p1 = por %p1842_p12, %p1841_p4 }
 0x3c9   : > { %p1844_p3 = pnand %p1843_p1, %p1837_p5 }
 0x3cb   : > { %1847 = shalt.err (!%p1844_p3)
}
 0x3cc   : > { %s1918_s23 = smov 64   ;;  %s1919_s20 = smov 4  }
 0x3cd   : > { %1456 = dma.vmem_to_hbm [thread:$0]  (%p2371_p13), %s2287_s26, 512, %s2296_s10, %s1031_s11, %s1918_s23, %s1918_s23, %s1919_s20  }
 0x3ce PF: > { %s1059_s19 = sand.u32 1, %s1890_s27   ;;  %p2372_p2 = scmp.ne.s32.totalorder %s2360_s18, 0 }
 0x3cf   : > { %p2373_p8 = scmp.ge.s32.totalorder %s1902_s30, 2  ;;  %s1060_s22 = scalar_lea.sflag [#allocation4], %s1059_s19 }
 0x3d1   : > { %p1485_p6 = pnand %p2373_p8, %p2372_p2 }
 0x3d3   : > { %1885 = dma.done.wait (!%p1485_p6), %s1060_s22, 512  }
 0x3d4   : > { %1887 = vsyncadd (!%p1485_p6), %s1060_s22, 4294966784  ;;  %p25_p10 = scmp.ge.s32.totalorder %s2168_s15, 4   ;;  %s2374_s27 = smov %s1894_s28 }
 0x3d5   : > { %s2375_s28 = smov %s1898_s29  ;;  %s2376_s29 = smov %s2180_s17 }
 0x3d6   : > { %s2377_s30 = smov %s2168_s15  ;;  %27 = sbr.rel (!%p25_p10) target bundleno = 11 (0xb), region = 125 }
 0x3dd   :  { %1065 = vsyncpa [#allocation3], 1 }
 0x3de   :  { %1067 = vsyncpa [#allocation3 + $0x1], 1 }
 0x3df   :  { %1068 = vsyncpa [#allocation6], 1 }
 0x3e0   :  { %1069 = vsyncpa [#allocation9], 1 }
 0x3e1   :  { %1070 = vsyncpa [#allocation12], 1 }
 0x3e2   :  { %1071 = vsyncpa [#allocation15], 1 }
 0x3e3   :  { %1072 = vsyncpa [#allocation4], 1 }
 0x3e4   :  { %1074 = vsyncpa [#allocation4 + $0x1], 1 }

</bundles_post_ra>
